<compile_context>
chip_gen: v7x
topology: tpu7x:2x2x1
jax: 0.10.0
libtpu: 0.0.40
codegen_flags: <defaults>
</compile_context>

<pallas_src>
import functools

import jax
import jax.numpy as jnp
from jax.experimental import pallas as pl
from jax.experimental.pallas import tpu as pltpu


def _round_up(x, m):
    return ((x + m - 1) // m) * m


def _pick_hw_tiling(hw, max_cols):
    """Choose the HW (lane-axis) tile.  Returns (t_hw, n_tiles, hw_padded)."""
    if hw <= max(max_cols, 128):
        # Single full-extent tile: no (8,128) constraint, no padding.
        return hw, 1, hw
    cap = max(128, (max_cols // 128) * 128)
    # Prefer a lane-aligned tile that divides HW exactly (no padding copy).
    for t in range(cap, 127, -128):
        if hw % t == 0:
            return t, hw // t, hw
    # Otherwise balance tiles and zero-pad the remainder.
    n = pl.cdiv(hw, cap)
    t = _round_up(pl.cdiv(hw, n), 128)
    n = pl.cdiv(hw, t)
    return t, n, t * n


def _pool_kernel(x_ref, o_ref, *, inv_hw):
    # x_ref: (1, C, T_hw) tile of (B, C, HW_pad); o_ref: (1, C, 1) f32 mean.
    # The output block index is constant along the HW grid axis, so o_ref is
    # resident across it and doubles as the accumulator (no scratch needed).
    t = pl.program_id(1)

    @pl.when(t == 0)
    def _():
        o_ref[...] = jnp.zeros_like(o_ref)

    x = x_ref[0].astype(jnp.float32)                       # (C, T_hw)
    # Lane (XLU) reduction; 1/HW folded in.  Zero-padded columns add nothing.
    o_ref[0] += jnp.sum(x, axis=-1, keepdims=True) * inv_hw


def _scale_kernel(x_ref, g_ref, o_ref):
    # x_ref/o_ref: (1, C, T_hw); g_ref: (1, C, 1) f32 gate.  The gate column
    # broadcasts along lanes (HW) -- no transposes, lane-dense stores.
    x = x_ref[0].astype(jnp.float32)                       # (C, T_hw)
    o_ref[0] = (x * g_ref[0]).astype(o_ref.dtype)


def se_layer(x, w1, w2, *, target_tile_bytes=2 << 20):
    """SE forward.  x: (B, C, H, W); w1: (C, C//r) = fc[0].weight.T;
    w2: (C//r, C) = fc[2].weight.T.  Returns (B, C, H, W), same dtype as x."""
    B, C, H, W = x.shape
    HW = H * W
    itemsize = jnp.dtype(x.dtype).itemsize

    # Free reshape (NCHW is contiguous): channels -> sublanes, HW -> lanes.
    x_flat = x.reshape(B, C, HW)

    # ---- HW tiling: ~target_tile_bytes per block, lane tile mult. of 128 ----
    max_cols = max(128, target_tile_bytes // max(1, C * itemsize))
    t_hw, n_t, hw_pad = _pick_hw_tiling(HW, max_cols)
    if hw_pad != HW:
        # Zero padding: exact for the mean; padded outputs are sliced off.
        x_flat = jnp.pad(x_flat, ((0, 0), (0, 0), (0, hw_pad - HW)))

    tile_bytes = C * t_hw * itemsize
    # Double-buffered in/out tiles plus headroom; lifts v5e's 16 MiB scoped
    # default while staying well under v7x's 64 MiB physical VMEM.
    vmem_limit = int(min(64 * 2**20, max(32 * 2**20, 8 * tile_bytes + 4 * 2**20)))
    # TODO(synk): for extremely large C the (1, C, t_hw) block should also be
    # tiled along C; left untiled here since C*128*itemsize fits VMEM for
    # realistic SE channel counts.

    # ---------------- 1) squeeze: global average pool ----------------
    pooled = pl.pallas_call(
        functools.partial(_pool_kernel, inv_hw=1.0 / float(HW)),
        out_shape=jax.ShapeDtypeStruct((B, C, 1), jnp.float32),
        grid_spec=pltpu.PrefetchScalarGridSpec(
            num_scalar_prefetch=0,
            grid=(B, n_t),
            in_specs=[pl.BlockSpec((1, C, t_hw), lambda b, t: (b, 0, t))],
            out_specs=pl.BlockSpec((1, C, 1), lambda b, t: (b, 0, 0)),
        ),
        compiler_params=pltpu.CompilerParams(
            dimension_semantics=("parallel", "arbitrary"),
            vmem_limit_bytes=vmem_limit,
        ),
        cost_estimate=pl.CostEstimate(
            flops=B * hw_pad * C,
            transcendentals=0,
            bytes_accessed=B * hw_pad * C * itemsize + B * C * 4,
        ),
    )(x_flat)

    # ------------- 2) excitation: FC -> ReLU -> FC -> sigmoid -------------
    # A few-KB batched matmul chain; kept in plain JAX, off the HBM-bound path.
    y = pooled[:, :, 0]                                              # (B, C) f32
    h = jnp.maximum(y @ w1.astype(jnp.float32), 0.0)                 # (B, Cr)
    gate = jax.nn.sigmoid(h @ w2.astype(jnp.float32))[:, :, None]    # (B, C, 1)

    # ---------------- 3) scale: x * gate, tiled over (B, HW) ----------------
    out_flat = pl.pallas_call(
        _scale_kernel,
        out_shape=jax.ShapeDtypeStruct((B, C, hw_pad), x.dtype),
        grid_spec=pltpu.PrefetchScalarGridSpec(
            num_scalar_prefetch=0,
            grid=(B, n_t),
            in_specs=[
                pl.BlockSpec((1, C, t_hw), lambda b, t: (b, 0, t)),
                pl.BlockSpec((1, C, 1), lambda b, t: (b, 0, 0)),
            ],
            out_specs=pl.BlockSpec((1, C, t_hw), lambda b, t: (b, 0, t)),
        ),
        compiler_params=pltpu.CompilerParams(
            dimension_semantics=("parallel", "parallel"),
            vmem_limit_bytes=vmem_limit,
        ),
        cost_estimate=pl.CostEstimate(
            flops=B * hw_pad * C,
            transcendentals=0,
            bytes_accessed=2 * B * hw_pad * C * itemsize + B * C * 4,
        ),
    )(x_flat, gate)

    if hw_pad != HW:
        out_flat = out_flat[:, :, :HW]
    return out_flat.reshape(B, C, H, W)


def se_layer_ref(x, w1, w2):
    """Pure-JAX reference mirroring the PyTorch forward."""
    y = jnp.mean(x, axis=(2, 3))                    # AdaptiveAvgPool2d(1) + view(b, c)
    y = jnp.maximum(y @ w1, 0.0)                    # Linear(C, C//r, bias=False) + ReLU
    y = jax.nn.sigmoid(y @ w2)                      # Linear(C//r, C, bias=False) + Sigmoid
    return x * y[:, :, None, None]


if __name__ == "__main__":
    B, C, H, W = 2, 4, 16, 16
    reduction = 1
    Cr = C // reduction

    key = jax.random.PRNGKey(0)
    kx, k1, k2 = jax.random.split(key, 3)

    x = jax.random.normal(kx, (B, C, H, W), dtype=jnp.float32)
    # PyTorch nn.Linear stores weight as (out, in) and computes y = x @ W.T;
    # we store the transposed (in, out) matrices directly.
    w1 = jax.random.normal(k1, (C, Cr), dtype=jnp.float32) * 0.1   # fc[0].weight.T
    w2 = jax.random.normal(k2, (Cr, C), dtype=jnp.float32) * 0.1   # fc[2].weight.T

    out = se_layer(x, w1, w2)
    out = jax.block_until_ready(out)

    ref = se_layer_ref(x, w1, w2)
    assert out.shape == (B, C, H, W)
    assert jnp.allclose(out, ref, atol=1e-5, rtol=1e-5), "mismatch vs reference"

    print("KERNEL_OK")
</pallas_src>

<mosaic_0001>
module attributes {stable_mosaic.version = 11 : i64} {
  func.func @_pool_kernel(%arg0: i32, %arg1: i32, %arg2: memref<1x4x256xf32, #tpu.memory_space<vmem>>, %arg3: memref<1x4x1xf32, #tpu.memory_space<vmem>>) attributes {dimension_semantics = [#tpu.dimension_semantics<parallel>, #tpu.dimension_semantics<arbitrary>], iteration_bounds = array<i64: 2, 1>, scalar_prefetch = 0 : i64, scratch_operands = 0 : i64, tpu.core_type = #tpu.core_type<tc>, window_params = [{transform_indices = @transform_0, window_bounds = array<i64: 1, 4, 256>}, {transform_indices = @transform_1, window_bounds = array<i64: 1, 4, 1>}]} {
    %c0_i32 = arith.constant 0 : i32
    %0 = arith.cmpi eq, %arg1, %c0_i32 : i32
    %1 = arith.extui %0 : i1 to i32
    %c0_i32_0 = arith.constant 0 : i32
    %2 = arith.cmpi ne, %1, %c0_i32_0 : i32
    scf.if %2 {
      %cst_10 = arith.constant 0.000000e+00 : f32
      %15 = vector.broadcast %cst_10 : f32 to vector<1x4x1xf32>
      %c0_11 = arith.constant 0 : index
      %c0_12 = arith.constant 0 : index
      %c0_13 = arith.constant 0 : index
      %16 = vector.load %arg3[%c0_11, %c0_12, %c0_13] : memref<1x4x1xf32, #tpu.memory_space<vmem>>, vector<1x4x1xf32>
      tpu.vector_store %arg3[%c0_11, %c0_12, %c0_13], %15 {strides = array<i32>} : memref<1x4x1xf32, #tpu.memory_space<vmem>>, vector<1x4x1xf32>,
    } else {
    }
    %c0 = arith.constant 0 : index
    %c0_1 = arith.constant 0 : index
    %c0_2 = arith.constant 0 : index
    %3 = vector.load %arg2[%c0, %c0_1, %c0_2] : memref<1x4x256xf32, #tpu.memory_space<vmem>>, vector<1x4x256xf32>
    %4 = vector.shape_cast %3 : vector<1x4x256xf32> to vector<4x256xf32>
    %c0_3 = arith.constant 0 : index
    %c0_4 = arith.constant 0 : index
    %c0_5 = arith.constant 0 : index
    %5 = vector.load %arg3[%c0_3, %c0_4, %c0_5] : memref<1x4x1xf32, #tpu.memory_space<vmem>>, vector<1x4x1xf32>
    %6 = vector.shape_cast %5 : vector<1x4x1xf32> to vector<4x1xf32>
    %cst = arith.constant dense<0.000000e+00> : vector<4xf32>
    %7 = vector.multi_reduction <add>, %4, %cst [1] : vector<4x256xf32> to vector<4xf32>
    %8 = vector.shape_cast %7 : vector<4xf32> to vector<4x1xf32>
    %cst_6 = arith.constant 3.906250e-03 : f32
    %9 = vector.broadcast %cst_6 : f32 to vector<4x1xf32>
    %10 = arith.mulf %8, %9 : vector<4x1xf32>
    %11 = arith.addf %6, %10 : vector<4x1xf32>
    %c0_7 = arith.constant 0 : index
    %c0_8 = arith.constant 0 : index
    %c0_9 = arith.constant 0 : index
    %12 = vector.load %arg3[%c0_7, %c0_8, %c0_9] : memref<1x4x1xf32, #tpu.memory_space<vmem>>, vector<1x4x1xf32>
    %13 = vector.shape_cast %12 : vector<1x4x1xf32> to vector<4x1xf32>
    %14 = vector.shape_cast %11 : vector<4x1xf32> to vector<1x4x1xf32>
    tpu.vector_store %arg3[%c0_7, %c0_8, %c0_9], %14 {strides = array<i32>} : memref<1x4x1xf32, #tpu.memory_space<vmem>>, vector<1x4x1xf32>,
    return
  }
  func.func @transform_0(%arg0: i32, %arg1: i32) -> (i32, i32, i32) {
    %c0_i32 = arith.constant 0 : i32
    %c0_i32_0 = arith.constant 0 : i32
    return %arg0, %c0_i32, %arg1 : i32, i32, i32
  }
  func.func @transform_1(%arg0: i32, %arg1: i32) -> (i32, i32, i32) {
    %c0_i32 = arith.constant 0 : i32
    %c0_i32_0 = arith.constant 0 : i32
    %c0_i32_1 = arith.constant 0 : i32
    return %arg0, %c0_i32, %c0_i32_0 : i32, i32, i32
  }
}

</mosaic_0001>

<bundles_post_ra>
// kernel: tpu_custom_call.1
= control target key start
LH: loop header
LB: loop body
LE: loop exit
PB: predicated region body
PF: predicated region fallthrough
CT: control target
= control target key end

     0   :  { %6 = vsyncpa [#allocation3], 0  ;;  %s538_s0 = inlined_call_operand.hbm [shape: f32[2,4,256], index: 0, kind: input, shape index: {}]   ;;  %s539_s1 = inlined_call_operand.vmem [shape: f32[2,4,1], index: 1, kind: output, shape index: {}]  }
   0x1   :  { %8 = vsyncpa [#allocation3 + $0x1], 0  ;;  %s411_s6 = smov 0   ;;  %s413_s7 = smov 0  }
   0x2   :  { %s415_s8 = smov 0   ;;  %s417_s9 = smov 0  }
   0x3   :  { %s419_s10 = smov 0   ;;  %s421_s11 = smov 0  }
   0x4 LB: > { %s247_s12 = sadd.s32 4294967295, %s397_s11   ;;  %s26_s13 = sadd.s32 1, %s393_s10  ;;  %s397_s11 = sphi %s421_s11, %s14_s11   ;;  %s393_s10 = sphi %s419_s10, %s549_s10   ;;  %s389_s9 = sphi %s417_s9, %s548_s9   ;;  %s385_s8 = sphi %s415_s8, %s547_s8   ;;  %s381_s7 = sphi %s413_s7, %s546_s7   ;;  %s377_s6 = sphi %s411_s6, %s545_s6  }
   0x5   : > { %p28_p0 = scmp.ge.s32.totalorder %s26_s13, 2  ;;  %s35_s14 = sadd.s32 1, %s385_s8 }
   0x6   : > { %p42_p1 = scmp.ne.s32.totalorder %s385_s8, %s381_s7  ;;  %p43_p2 = scmp.eq.s32.totalorder %s397_s11, 0 }
   0x7   : > { %s551_s13 = smov (%p28_p0, %s26_s13), 0  ;;  %p48_p4 = scmp.ne.s32.totalorder %s381_s7, %s377_s6 }
   0x8   : > { %p447_p3 = por %p43_p2, %p42_p1  ;;  %s30_s16 = ssub.s32 %s393_s10, %s551_s13 }
   0x9   : > { %p49_p5 = scmp.eq.s32.totalorder %s247_s12, 0  ;;  %p33_p6 = scmp.eq.s32.totalorder %s30_s16, 0 }
   0xa   : > { %p266_p8 = scmp.lt.s32.totalorder %s397_s11, 2  ;;  %s98_s19 = sand.u32 1, %s385_s8  }
   0xb   : > { %p454_p7 = por %p49_p5, %p48_p4  ;;  %s259_s20 = sshll.u32 %s393_s10, 7 }
   0xc   : > { %s460_s18 = scalar_select %p33_p6, %s385_s8, %s35_s14  }
   0xd   : > { %s251_s21 = sshll.u32 %s98_s19, 3  ;;  %s467_s24 = scalar_lea.hbm %s538_s0, %s259_s20 }
   0xe   : > { %s102_s25 = scalar_lea.vmem [#allocation2], %s251_s21  ;;  %p471_p9 = pnand %p266_p8, %p447_p3 }
   0xf   : > { %s112_s26 = sshll.u32 %s102_s25, 4  ;;  %s99_s28 = scalar_lea.sflag [#allocation3], %s98_s19  ;;  %s475_s26 = int_to_ptr.vmem [resolvable:$true] %s112_s26 }
  0x10   : > { %s317_s29 = scalar_lea.hbm %s467_s24, 128  ;;  %p319_p13 = pneg %p471_p9 }
  0x11   : > { %p318_p12 = scmp.ne.s32.totalorder %s467_s24, %s317_s29  ;;  %s322_s3 = scalar_lea.hbm %s538_s0, 256 }
  0x12   : > { %p323_p2 = scmp.lt.u32.totalorder %s467_s24, %s538_s0  ;;  %p324_p3 = scmp.lt.u32.totalorder %s322_s3, %s317_s29 }
  0x13   : > { %p320_p0 = pnand %p319_p13, %p318_p12  ;;  %p326_p5 = scmp.lt.u32.totalorder %s317_s29, %s467_s24 }
  0x14   : > { %p325_p4 = por %p324_p3, %p323_p2 }
  0x15   : > { %p321_p1 = pneg %p320_p0 }
  0x16   : > { %p327_p6 = por %p326_p5, %p325_p4 }
  0x18   : > { %p328_p8 = pnand %p327_p6, %p321_p1 }
  0x1a   : > { %331 = shalt.err (!%p328_p8)
}
  0x1b   : > { %s332_s6 = scalar_lea.vmem %s475_s26, 128  ;;  %s399_s12 = smov [#allocation2]  }
  0x1c   : > { %p333_p12 = scmp.ne.s32.totalorder %s475_s26, %s332_s6  ;;  %s337_s14 = sshll.u32 %s399_s12, 4  ;;  %s338_s14 = int_to_ptr.vmem [resolvable:$false] %s337_s14 }
  0x1d   : > { %s339_s15 = scalar_lea.vmem %s338_s14, 256  ;;  %p340_p11 = scmp.lt.s32.totalorder %s475_s26, %s338_s14 }
  0x1e   : > { %p335_p0 = pnand %p333_p12, %p319_p13  ;;  %p341_p2 = scmp.lt.s32.totalorder %s339_s15, %s332_s6 }
  0x20   : > { %p336_p10 = pneg %p335_p0  ;;  %p342_p3 = por %p341_p2, %p340_p11 }
  0x22   : > { %p343_p4 = pnand %p342_p3, %p336_p10 }
  0x24   : > { %346 = shalt.err (!%p343_p4)
}
  0x25   : > { %265 = dma.hbm_to_vmem [thread:$0]  (!%p471_p9), %s467_s24, 128, %s475_s26, %s99_s28  }
  0x26   : > { %p543_p1 = scmp.lt.s32.totalorder %s397_s11, 3  ;;  %p544_p5 = scmp.ge.s32.totalorder %s397_s11, 1 }
  0x28   : > { %p118_p13 = pnand %p544_p5, %p543_p1 }
  0x29   : > { %s123_s16 = sand.u32 (!%p118_p13), 1, %s381_s7  }
  0x2a   : > { %121 = sbr.rel (%p118_p13) target bundleno = 203 (0xcb), region = 24  ;;  %s255_s19 = sshll.u32 (!%p118_p13), %s123_s16, 3 }
  0x2b   : > { %s124_s20 = scalar_lea.sflag (!%p118_p13), [#allocation3], %s123_s16  ;;  %s127_s21 = scalar_lea.vmem (!%p118_p13), [#allocation2], %s255_s19 }
  0x31   : > { %372 = dma.done.wait (%p454_p7), %s124_s20, 128  }
  0x32   : > { %374 = vsyncadd (%p454_p7), %s124_s20, 4294967168  ;;  %p146_p10 = scmp.lt.s32.totalorder %s389_s9, 1  ;;  %vm154_vm0 = vcmask 3072   ;;  %vm161_vm1 = vcmask 1043456   ;;  %v400_v0 = vmov 0.0   ;;  %v156_v1 = vld [vmem:[%s127_s21] sm:$0xff] }
  0x33   : > { %v159_v2 = vcombine.high %v156_v1, %v156_v1  ;;  %v162_v3 = vsel %vm161_vm1, %v156_v1, 0.0 }
  0x34   : > { %s553_s9 = smov (!%p146_p10, %s389_s9), 1 }
  0x35   : > { %s256_s22 = sshll.u32 %s553_s9, 2  ;;  %v163_v4 = vsel %vm161_vm1, %v159_v2, 0.0 }
  0x36   : > { %s149_s25 = scalar_lea.vmem %s539_s1, %s256_s22  ;;  %v164_v5 = vadd.f32 %v163_v4, %v162_v3 }
  0x37   : > { %155 = vst.msk [vmem:[%s149_s25] sm:$0xf] %vm154_vm0, %v400_v0 }
  0x38   : > { %165 = vadd.xlane.f32.xlu0 %v164_v5 }
  0x3e   : > { %v157_v6 = vld [vmem:[%s149_s25] sm:$0xf] }
  0xc5   : > { %v166_v7 = vpop.xlane.xlu0 %165 }
  0xc6   : > { %v167_v8 = vmul.f32 0.00390625, %v166_v7 }
  0xc8   : > { %v168_v9 = vadd.f32 %v167_v8, %v157_v6 }
  0xca   : > { %170 = vst.msk [vmem:[%s149_s25] sm:$0xf] %vm154_vm0, %v168_v9 }
  0xcb PF: > { %s14_s11 = sadd.s32 1, %s397_s11   ;;  %s545_s6 = smov %s381_s7 }
  0xcc   : > { %p11_p7 = scmp.ge.s32.totalorder %s14_s11, 4   ;;  %s546_s7 = smov %s385_s8 }
  0xcd   : > { %s547_s8 = smov %s460_s18  ;;  %s548_s9 = smov %s393_s10 }
  0xce   : > { %s549_s10 = smov %s551_s13  ;;  %13 = sbr.rel (!%p11_p7) target bundleno = 4 (0x4), region = 68 }
  0xd5   :  { %190 = vsyncpa [#allocation3], 1 }
  0xd6   :  { %192 = vsyncpa [#allocation3 + $0x1], 1 }

</bundles_post_ra>
